<compile_context>
chip_gen: v7x
topology: tpu7x:2x2x1
jax: 0.10.0
libtpu: 0.0.40
codegen_flags: <defaults>
</compile_context>

<pallas_src>
import numpy as np

import jax
import jax.numpy as jnp
from jax import lax
from jax.experimental import pallas as pl
from jax.experimental.pallas import tpu as pltpu

LANE = 128
SUBLANE = 8


def _round_up(x, m):
    return (x + m - 1) // m * m


_HW_CFG = None


def _hw_config():
    """Generation-aware tuning knobs (block budget, cores, buffer depth)."""
    global _HW_CFG
    if _HW_CFG is not None:
        return _HW_CFG
    kind = ""
    try:
        kind = jax.devices()[0].device_kind.lower()
    except Exception:
        pass
    if "v7" in kind or "7x" in kind:
        # v7x: ~3.2 TB/s HBM per TC -> 4 MiB blocks; 2 TCs -> CORE_PARALLEL axis.
        # 2 inputs x 2 bufs x 4 MiB = 16 MiB, inside the 32 MiB scoped default.
        cfg = dict(block_bytes=4 << 20, max_cores=2, core_parallel=True, n_bufs=2)
    elif "v6" in kind:
        # v6e: single TC, 32 MiB scoped-VMEM default -> 4 MiB blocks.
        cfg = dict(block_bytes=4 << 20, max_cores=1, core_parallel=False, n_bufs=2)
    elif "v5 lite" in kind or "v5e" in kind or "v5lite" in kind:
        # v5e: 16 MiB scoped default -> 2 MiB blocks, 3-deep pipelining
        # (2 inputs x 3 bufs x 2 MiB = 12 MiB).
        cfg = dict(block_bytes=2 << 20, max_cores=1, core_parallel=False, n_bufs=3)
    else:
        # Unknown generation: conservative defaults.
        cfg = dict(block_bytes=2 << 20, max_cores=1, core_parallel=False, n_bufs=2)
    _HW_CFG = cfg
    return cfg


def _choose_tile_rows(n_rows, n_cols, itemsize, block_bytes):
    padded_cols = _round_up(n_cols, LANE)  # VMEM footprint is lane-padded
    rows = (block_bytes // (padded_cols * itemsize)) // SUBLANE * SUBLANE
    rows = max(rows, SUBLANE)
    if rows >= n_rows:
        return n_rows          # one block spans the full row extent (always legal)
    return rows                # multiple of 8; ragged tail masked in-kernel


def _build_smooth_l1_sum(n_rows, n_cols, itemsize, with_scale):
    """Returns a pallas_call computing per-core partial sums of
    SmoothL1(pred, gt) [* scale_row]."""
    cfg = _hw_config()
    tile_r = _choose_tile_rows(n_rows, n_cols, itemsize, cfg["block_bytes"])
    n_tiles = pl.cdiv(n_rows, tile_r)
    n_cores = cfg["max_cores"] if n_tiles >= cfg["max_cores"] else 1
    tiles_per_core = pl.cdiv(n_tiles, n_cores)
    # Masking only needed for a ragged last tile or a clamped duplicate tile.
    need_mask = (n_rows % tile_r != 0) or (n_tiles % n_cores != 0)

    def kernel(*refs):
        if with_scale:
            s_ref, p_ref, g_ref, o_ref, acc_ref = refs
        else:
            p_ref, g_ref, o_ref, acc_ref = refs
        j = pl.program_id(1)

        @pl.when(j == 0)
        def _():
            acc_ref[...] = jnp.zeros_like(acc_ref)

        d = p_ref[...].astype(jnp.float32) - g_ref[...].astype(jnp.float32)
        ad = jnp.abs(d)
        per = jnp.where(ad < 1.0, 0.5 * d * d, ad - 0.5)
        if with_scale:
            per = per * s_ref[...]               # (1, n_cols) broadcast over rows

        if need_mask:
            t = pl.program_id(0) * tiles_per_core + j
            n_valid = n_rows - t * tile_r        # <= 0 for clamped duplicate tiles

            @pl.when(n_valid >= tile_r)          # interior tile: unmasked path
            def _():
                acc_ref[...] += jnp.sum(per, axis=0, keepdims=True)

            @pl.when(n_valid < tile_r)           # ragged tail / duplicate tile
            def _():
                row_ids = lax.broadcasted_iota(jnp.int32, (tile_r, 1), 0)
                masked = jnp.where(row_ids < n_valid, per, 0.0)
                acc_ref[...] += jnp.sum(masked, axis=0, keepdims=True)
        else:
            acc_ref[...] += jnp.sum(per, axis=0, keepdims=True)

        @pl.when(j == pl.num_programs(1) - 1)
        def _():
            o_ref[...] = acc_ref[...].reshape(1, 1, n_cols)

    def data_map(p, j):
        # Clamp so an over-hanging (p, j) never DMAs out of bounds; its
        # contribution is zeroed by the row mask above.
        return (jnp.minimum(p * tiles_per_core + j, n_tiles - 1), 0)

    def data_spec():
        if cfg["n_bufs"] > 2:
            try:   # deeper pipelining (v5e): hides more exposed DMA latency
                return pl.BlockSpec((tile_r, n_cols), data_map,
                                    pipeline_mode=pl.Buffered(cfg["n_bufs"]))
            except TypeError:
                pass
        return pl.BlockSpec((tile_r, n_cols), data_map)

    in_specs = []
    if with_scale:
        in_specs.append(pl.BlockSpec((1, n_cols), lambda p, j: (0, 0)))
    in_specs += [data_spec(), data_spec()]

    if n_cores > 1 and cfg["core_parallel"]:
        # Real 2-TensorCore sharding on v7x.
        dim_sem = (getattr(pltpu, "CORE_PARALLEL", "parallel"),
                   getattr(pltpu, "ARBITRARY", "arbitrary"))
    else:
        dim_sem = ("parallel", "arbitrary")

    bytes_accessed = 2 * n_rows * n_cols * itemsize + n_cores * n_cols * 4
    if with_scale:
        bytes_accessed += n_cols * 4

    return pl.pallas_call(
        kernel,
        out_shape=jax.ShapeDtypeStruct((n_cores, 1, n_cols), jnp.float32),
        grid_spec=pltpu.PrefetchScalarGridSpec(
            num_scalar_prefetch=0,
            grid=(n_cores, tiles_per_core),
            in_specs=in_specs,
            out_specs=pl.BlockSpec((1, 1, n_cols), lambda p, j: (p, 0, 0)),
            scratch_shapes=[pltpu.VMEM((1, n_cols), jnp.float32)],
        ),
        compiler_params=pltpu.CompilerParams(dimension_semantics=dim_sem),
        cost_estimate=pl.CostEstimate(
            flops=int(8 * n_rows * n_cols),
            transcendentals=0,
            bytes_accessed=int(bytes_accessed)),
    )


def _smooth_l1_sum_2d(pred2d, gt2d, scale_row=None):
    n_rows, n_cols = pred2d.shape
    itemsize = max(pred2d.dtype.itemsize, gt2d.dtype.itemsize)
    call = _build_smooth_l1_sum(n_rows, n_cols, itemsize,
                                with_scale=scale_row is not None)
    if scale_row is None:
        partials = call(pred2d, gt2d)
    else:
        partials = call(scale_row.astype(jnp.float32), pred2d, gt2d)
    return jnp.sum(partials)


@jax.jit
def smooth_l1_mean(pred, gt):
    """SmoothL1Loss (beta=1.0, reduction='mean') via the Pallas TPU kernel."""
    assert pred.shape == gt.shape
    flat_p = pred.reshape(-1)
    flat_g = gt.reshape(-1)
    n = flat_p.shape[0]
    n_main = (n // LANE) * LANE
    total = jnp.float32(0.0)
    if n_main == n:
        # Common case: fully lane-dense (N/128, 128) slab, no copies.
        total = _smooth_l1_sum_2d(flat_p.reshape(-1, LANE),
                                  flat_g.reshape(-1, LANE))
    else:
        if n_main > 0:
            total = total + _smooth_l1_sum_2d(
                flat_p[:n_main].reshape(-1, LANE),
                flat_g[:n_main].reshape(-1, LANE))
        # Tiny (<128-element) ragged tail: plain JAX (negligible, keeps the
        # kernel 100% lane-dense instead of streaming a narrow last dim).
        dp = flat_p[n_main:].astype(jnp.float32) - flat_g[n_main:].astype(jnp.float32)
        ad = jnp.abs(dp)
        total = total + jnp.sum(jnp.where(ad < 1.0, 0.5 * dp * dp, ad - 0.5))
    return total / jnp.float32(pred.size)


@jax.jit
def _weighted_smooth_l1(pred, gt, base_scale):
    """sum_k w_k * SmoothL1_mean(split_k) fused into ONE kernel pass.

    base_scale has shape (1, D) holding (rep_weight / split_width) per feature;
    dividing by the row count turns per-element terms into per-split means.
    """
    d_feat = pred.shape[-1]
    p2 = pred.reshape(-1, d_feat)
    g2 = gt.reshape(-1, d_feat)
    scale_row = base_scale.astype(jnp.float32) / jnp.float32(p2.shape[0])
    return _smooth_l1_sum_2d(p2, g2, scale_row)


class ReConsLoss:
    """JAX/Pallas port of core.models.loss.ReConsLoss (l1_smooth recon loss)."""

    def __init__(self, recons_loss="l1_smooth", use_geodesic_loss=False,
                 use_simple_loss=True, nb_joints=52, hml_rep="gprvc",
                 body_or_full=True, remove_translation=False, skel=None):
        assert recons_loss == "l1_smooth", "only l1_smooth implemented"
        # TODO(synk): use_geodesic_loss / skel offset loss / get_c_from_v are
        # unused by forward() in the reference and depend on external data
        # files; not ported.
        self.use_simple_loss = use_simple_loss
        self.nb_joints = nb_joints
        self.hml_rep = hml_rep

        split_seq = []
        if "g" in hml_rep:
            split_seq.append(4 if not remove_translation else 2)
        if "p" in hml_rep:
            split_seq.append((nb_joints - 1) * 3 if body_or_full else nb_joints * 3)
        if "r" in hml_rep:
            split_seq.append((nb_joints - 1) * 6 if body_or_full else nb_joints * 6)
        if "v" in hml_rep:
            split_seq.append(nb_joints * 3)
        if "c" in hml_rep:
            split_seq.append(4)
        self.split_seq = split_seq

        # Per-feature (rep_weight / split_width) for the fused non-simple path.
        base = []
        for rep, width in zip(hml_rep, split_seq):
            w = 1.5 if rep == "g" else 1.0
            base.extend([w / width] * width)
        self._base_scale = jnp.asarray(np.asarray(base, np.float32)[None, :])

    def __call__(self, motion_pred, motion_gt, mask=None):
        if self.use_simple_loss:
            return smooth_l1_mean(motion_pred, motion_gt)

        if mask is None:
            # Fused single-pass weighted SmoothL1 (no K launches / split copies).
            return _weighted_smooth_l1(motion_pred, motion_gt, self._base_scale)

        # Masked path: mirror the original PyTorch broadcasting literally.
        # TODO(synk): torch indexes mask_split[indx] along dim 0 (batch), which
        # looks fragile in the reference code; reproduced as-is, not fused.
        offsets = np.concatenate([[0], np.cumsum(self.split_seq)]).astype(int)
        mask_split = mask[..., : self.split_seq[0]]
        loss = jnp.float32(0.0)
        for indx, rep in enumerate(self.hml_rep):
            lo, hi = int(offsets[indx]), int(offsets[indx + 1])
            msk = mask_split[indx]
            mp = motion_pred[..., lo:hi] * msk[..., None]
            mg = motion_gt[..., lo:hi] * msk[..., None]
            w = 1.5 if rep == "g" else 1.0
            loss = loss + w * smooth_l1_mean(mp, mg)
        return loss


if __name__ == "__main__":
    key = jax.random.PRNGKey(0)
    k1, k2, k3, k4 = jax.random.split(key, 4)

    def _ref_smooth_l1_mean(a, b):
        d = a.astype(jnp.float32) - b.astype(jnp.float32)
        ad = jnp.abs(d)
        return jnp.mean(jnp.where(ad < 1.0, 0.5 * d * d, ad - 0.5))

    # 1) Simple path (default config), small shape (B, T, D) = (2, 8, 32).
    B, T, D = 2, 8, 32
    motion_pred = jax.random.normal(k1, (B, T, D), dtype=jnp.float32)
    motion_gt = jax.random.normal(k2, (B, T, D), dtype=jnp.float32)
    loss_mod = ReConsLoss()  # defaults: l1_smooth + use_simple_loss=True
    loss = jax.block_until_ready(loss_mod(motion_pred, motion_gt))
    ref = _ref_smooth_l1_mean(motion_pred, motion_gt)
    assert jnp.allclose(loss, ref, rtol=1e-5, atol=1e-6), (loss, ref)

    # 2) Multi-tile / ragged-tail path (also the 2-core split on v7x).
    xp = jax.random.normal(k3, (2, 4800, 128), dtype=jnp.float32)
    xg = jax.random.normal(k4, (2, 4800, 128), dtype=jnp.float32)
    loss2 = jax.block_until_ready(smooth_l1_mean(xp, xg))
    ref2 = _ref_smooth_l1_mean(xp, xg)
    assert jnp.allclose(loss2, ref2, rtol=1e-4, atol=1e-6), (loss2, ref2)

    # 3) Total size not a multiple of 128: lane-dense slab + tiny JAX remainder.
    yp = jax.random.normal(k1, (3, 7, 13), dtype=jnp.float32)
    yg = jax.random.normal(k2, (3, 7, 13), dtype=jnp.float32)
    loss3 = jax.block_until_ready(smooth_l1_mean(yp, yg))
    ref3 = _ref_smooth_l1_mean(yp, yg)
    assert jnp.allclose(loss3, ref3, rtol=1e-5, atol=1e-6), (loss3, ref3)

    # 4) Fused non-simple path (use_simple_loss=False, mask=None).
    loss_mod_ns = ReConsLoss(use_simple_loss=False)
    Df = sum(loss_mod_ns.split_seq)  # 623 for defaults (gprvc, 52 joints)
    mp = jax.random.normal(k1, (2, 8, Df), dtype=jnp.float32)
    mg = jax.random.normal(k2, (2, 8, Df), dtype=jnp.float32)
    loss4 = jax.block_until_ready(loss_mod_ns(mp, mg))
    ref4, off = jnp.float32(0.0), 0
    for rep, width in zip(loss_mod_ns.hml_rep, loss_mod_ns.split_seq):
        w = 1.5 if rep == "g" else 1.0
        ref4 = ref4 + w * _ref_smooth_l1_mean(mp[..., off:off + width],
                                              mg[..., off:off + width])
        off += width
    assert jnp.allclose(loss4, ref4, rtol=1e-4, atol=1e-6), (loss4, ref4)

    print("KERNEL_OK")
</pallas_src>

<mosaic_0001>
module attributes {stable_mosaic.version = 11 : i64} {
  func.func @kernel(%arg0: i32, %arg1: i32, %arg2: memref<4x128xf32, #tpu.memory_space<vmem>>, %arg3: memref<4x128xf32, #tpu.memory_space<vmem>>, %arg4: memref<1x1x128xf32, #tpu.memory_space<vmem>>, %arg5: memref<1x128xf32, #tpu.memory_space<vmem>>) attributes {dimension_semantics = [#tpu.dimension_semantics<parallel>, #tpu.dimension_semantics<arbitrary>], iteration_bounds = array<i64: 1, 1>, scalar_prefetch = 0 : i64, scratch_operands = 1 : i64, tpu.core_type = #tpu.core_type<tc>, window_params = [{transform_indices = @transform_0, window_bounds = array<i64: 4, 128>}, {transform_indices = @transform_1, window_bounds = array<i64: 4, 128>}, {transform_indices = @transform_2, window_bounds = array<i64: 1, 1, 128>}]} {
    %c0_i32 = arith.constant 0 : i32
    %0 = arith.cmpi eq, %arg1, %c0_i32 : i32
    %1 = arith.extui %0 : i1 to i32
    %c0_i32_0 = arith.constant 0 : i32
    %2 = arith.cmpi ne, %1, %c0_i32_0 : i32
    scf.if %2 {
      %cst_13 = arith.constant 0.000000e+00 : f32
      %23 = vector.broadcast %cst_13 : f32 to vector<1x128xf32>
      %c0_14 = arith.constant 0 : index
      %c0_15 = arith.constant 0 : index
      %24 = vector.load %arg5[%c0_14, %c0_15] : memref<1x128xf32, #tpu.memory_space<vmem>>, vector<1x128xf32>
      tpu.vector_store %arg5[%c0_14, %c0_15], %23 {strides = array<i32>} : memref<1x128xf32, #tpu.memory_space<vmem>>, vector<1x128xf32>,
    } else {
    }
    %c0 = arith.constant 0 : index
    %c0_1 = arith.constant 0 : index
    %3 = vector.load %arg2[%c0, %c0_1] : memref<4x128xf32, #tpu.memory_space<vmem>>, vector<4x128xf32>
    %c0_2 = arith.constant 0 : index
    %c0_3 = arith.constant 0 : index
    %4 = vector.load %arg3[%c0_2, %c0_3] : memref<4x128xf32, #tpu.memory_space<vmem>>, vector<4x128xf32>
    %5 = arith.subf %3, %4 : vector<4x128xf32>
    %6 = math.absf %5 : vector<4x128xf32>
    %cst = arith.constant 1.000000e+00 : f32
    %7 = vector.broadcast %cst : f32 to vector<4x128xf32>
    %8 = arith.cmpf olt, %6, %7 : vector<4x128xf32>
    %cst_4 = arith.constant 5.000000e-01 : f32
    %9 = vector.broadcast %cst_4 : f32 to vector<4x128xf32>
    %10 = arith.mulf %9, %5 : vector<4x128xf32>
    %11 = arith.mulf %10, %5 : vector<4x128xf32>
    %cst_5 = arith.constant 5.000000e-01 : f32
    %12 = vector.broadcast %cst_5 : f32 to vector<4x128xf32>
    %13 = arith.subf %6, %12 : vector<4x128xf32>
    %14 = arith.select %8, %11, %13 : vector<4x128xi1>, vector<4x128xf32>
    %c0_6 = arith.constant 0 : index
    %c0_7 = arith.constant 0 : index
    %15 = vector.load %arg5[%c0_6, %c0_7] : memref<1x128xf32, #tpu.memory_space<vmem>>, vector<1x128xf32>
    %cst_8 = arith.constant dense<0.000000e+00> : vector<128xf32>
    %16 = vector.multi_reduction <add>, %14, %cst_8 [0] : vector<4x128xf32> to vector<128xf32>
    %17 = vector.shape_cast %16 : vector<128xf32> to vector<1x128xf32>
    %18 = arith.addf %15, %17 : vector<1x128xf32>
    %c0_9 = arith.constant 0 : index
    %c0_10 = arith.constant 0 : index
    %19 = vector.load %arg5[%c0_9, %c0_10] : memref<1x128xf32, #tpu.memory_space<vmem>>, vector<1x128xf32>
    tpu.vector_store %arg5[%c0_9, %c0_10], %18 {strides = array<i32>} : memref<1x128xf32, #tpu.memory_space<vmem>>, vector<1x128xf32>,
    %c0_i32_11 = arith.constant 0 : i32
    %20 = arith.cmpi eq, %arg1, %c0_i32_11 : i32
    %21 = arith.extui %20 : i1 to i32
    %c0_i32_12 = arith.constant 0 : i32
    %22 = arith.cmpi ne, %21, %c0_i32_12 : i32
    scf.if %22 {
      %c0_13 = arith.constant 0 : index
      %c0_14 = arith.constant 0 : index
      %23 = vector.load %arg5[%c0_13, %c0_14] : memref<1x128xf32, #tpu.memory_space<vmem>>, vector<1x128xf32>
      %24 = vector.shape_cast %23 : vector<1x128xf32> to vector<1x1x128xf32>
      %c0_15 = arith.constant 0 : index
      %c0_16 = arith.constant 0 : index
      %c0_17 = arith.constant 0 : index
      %25 = vector.load %arg4[%c0_15, %c0_16, %c0_17] : memref<1x1x128xf32, #tpu.memory_space<vmem>>, vector<1x1x128xf32>
      tpu.vector_store %arg4[%c0_15, %c0_16, %c0_17], %24 {strides = array<i32>} : memref<1x1x128xf32, #tpu.memory_space<vmem>>, vector<1x1x128xf32>,
    } else {
    }
    return
  }
  func.func @transform_0(%arg0: i32, %arg1: i32) -> (i32, i32) {
    %c1_i32 = arith.constant 1 : i32
    %0 = arith.muli %arg0, %c1_i32 : i32
    %1 = arith.addi %0, %arg1 : i32
    %c0_i32 = arith.constant 0 : i32
    %2 = arith.minsi %1, %c0_i32 : i32
    %c0_i32_0 = arith.constant 0 : i32
    %c0_i32_1 = arith.constant 0 : i32
    return %2, %c0_i32_0 : i32, i32
  }
  func.func @transform_1(%arg0: i32, %arg1: i32) -> (i32, i32) {
    %c1_i32 = arith.constant 1 : i32
    %0 = arith.muli %arg0, %c1_i32 : i32
    %1 = arith.addi %0, %arg1 : i32
    %c0_i32 = arith.constant 0 : i32
    %2 = arith.minsi %1, %c0_i32 : i32
    %c0_i32_0 = arith.constant 0 : i32
    %c0_i32_1 = arith.constant 0 : i32
    return %2, %c0_i32_0 : i32, i32
  }
  func.func @transform_2(%arg0: i32, %arg1: i32) -> (i32, i32, i32) {
    %c0_i32 = arith.constant 0 : i32
    %c0_i32_0 = arith.constant 0 : i32
    %c0_i32_1 = arith.constant 0 : i32
    return %arg0, %c0_i32, %c0_i32_0 : i32, i32, i32
  }
}

</mosaic_0001>

<bundles_post_ra>
// kernel: smooth_l1_mean.1
= control target key start
LH: loop header
LB: loop body
LE: loop exit
PB: predicated region body
PF: predicated region fallthrough
CT: control target
= control target key end

     0   :  { %v113_v0 = vmov 0.0   ;;  %vm80_vm1 = vcmask 1043456   ;;  %s138_s0 = inlined_call_operand.vmem [shape: f32[4,128], index: 0, kind: input, shape index: {}]   ;;  %s139_s1 = inlined_call_operand.vmem [shape: f32[4,128], index: 1, kind: input, shape index: {}]   ;;  %s140_s2 = inlined_call_operand.vmem [shape: f32[1,1,128], index: 2, kind: output, shape index: {}]  }
   0x1   :  { %69 = vst [vmem:[#allocation2] sm:$0x1] %v113_v0  ;;  %v70_v1 = vld [vmem:[%s138_s0] sm:$0xf] }
   0x2   :  { %v71_v2 = vld [vmem:[%s139_s1] sm:$0xf] }
   0x3   :  { %v72_v3 = vsub.f32 %v70_v1, %v71_v2 }
   0x5   :  { %v73_v4 = vand.u32 2147483647, %v72_v3  ;;  %v75_v5 = vmul.f32 0.5, %v72_v3 }
   0x7   :  { %vm74_vm0 = vcmp.lt.f32.partialorder %v73_v4, 1.0  ;;  %v76_v6 = vmul.f32 %v75_v5, %v72_v3  ;;  %v111_v7 = vadd.f32 -0.5, %v73_v4 }
   0x8   :  { %v79_v15 = vld [vmem:[#allocation2] sm:$0x1] }
   0x9   :  { %v78_v8 = vsel %vm74_vm0, %v76_v6, %v111_v7 }
   0xa   :  { %v81_v9 = vsel %vm80_vm1, %v78_v8, 0.0 }
   0xb   :  { %v82_v10 = vrot.slane %v81_v9, 4 }
   0xd   :  { %v83_v11 = vadd.f32 %v82_v10, %v81_v9 }
   0xf   :  { %v84_v12 = vrot.slane %v83_v11, 2 }
  0x11   :  { %v85_v13 = vadd.f32 %v84_v12, %v83_v11 }
  0x13   :  { %v86_v14 = vrot.slane %v85_v13, 1 }
  0x15   :  { %v87_v16 = vadd.f32 %v86_v14, %v85_v13 }
  0x17   :  { %v88_v17 = vadd.f32 %v87_v16, %v79_v15 }
  0x19   :  { %89 = vst [vmem:[#allocation2] sm:$0x1] %v88_v17 }
  0x20   :  { %v93_v18 = vld [vmem:[#allocation2] sm:$0x1] }
  0x21   :  { %94 = vst [vmem:[%s140_s2] sm:$0x1] %v93_v18 }

</bundles_post_ra>
